<compile_context>
chip_gen: v7x
topology: tpu7x:2x2x1
jax: 0.10.0
libtpu: 0.0.40
codegen_flags: <defaults>
</compile_context>

<pallas_src>
import functools

import jax
import jax.numpy as jnp
from jax.experimental import pallas as pl
from jax.experimental.pallas import tpu as pltpu


def _layernorm(h, g, b, eps=1e-5):
    mu = jnp.mean(h, axis=-1, keepdims=True)
    var = jnp.mean((h - mu) ** 2, axis=-1, keepdims=True)
    return (h - mu) * jax.lax.rsqrt(var + eps) * g + b


def attention_qnet_kernel(mt, bsz, nh, hd,
                          x_ref, w1_ref, wqkv_ref, wo_ref, wp_ref, wa_ref,
                          wb_ref, vec_ref, out_ref):
    """One grid step = `mt` independent problems of `bsz` rows each."""
    H = w1_ref.shape[1]          # hidden_dim
    Hh = wa_ref.shape[1]         # hidden_dim // 2
    OUT = wb_ref.shape[1]        # lane-padded output width
    R = mt * bsz                 # rows processed this step

    x = x_ref[...]               # (R, input_dim) -- problem-major rows
    vec = vec_ref[...]           # (16, vec_w) packed biases / LayerNorm affines

    def row(i, w):               # one packed (1, w) vector
        return vec[i:i + 1, 0:w]

    # --- feature_embed: Linear -> LayerNorm -> ReLU (Dropout = identity) ---
    h0 = jnp.dot(x, w1_ref[...], preferred_element_type=jnp.float32) + row(0, H)
    e = jnp.maximum(_layernorm(h0, row(1, H), row(2, H)), 0.0)          # (R, H)

    # --- fused QKV: one (R, H) @ (H, 3H) matmul; Q columns/bias pre-scaled ---
    qkv = jnp.dot(e, wqkv_ref[...],
                  preferred_element_type=jnp.float32) + row(3, 3 * H)   # (R, 3H)

    def split_heads(col0):
        # (R, hd) lane slice per head, viewed per problem -> (nh*mt, bsz, hd).
        # The (R, hd) -> (mt, bsz, hd) reshape is sublane-tile aligned (bsz = 8).
        parts = [qkv[:, col0 + h * hd: col0 + (h + 1) * hd].reshape(mt, bsz, hd)
                 for h in range(nh)]
        return jnp.concatenate(parts, axis=0)

    q = split_heads(0)           # (nh*mt, bsz, hd), already scaled by 1/sqrt(hd)
    k = split_heads(H)
    v = split_heads(2 * H)

    # --- attention, batched over (head, problem) ---
    s = jax.lax.dot_general(q, k, (((2,), (2,)), ((0,), (0,))),
                            preferred_element_type=jnp.float32)         # (nh*mt, bsz, bsz)
    s = s - jnp.max(s, axis=-1, keepdims=True)
    p = jnp.exp(s)
    p = p * pl.reciprocal(jnp.sum(p, axis=-1, keepdims=True), approx=True)
    o = jax.lax.dot_general(p, v, (((2,), (1,)), ((0,), (0,))),
                            preferred_element_type=jnp.float32)         # (nh*mt, bsz, hd)

    # --- output projection: contract hd per head on the MXU, reduce heads on VPU ---
    o_h = o.reshape(nh, R, hd)                                          # tile-aligned merge
    t = jax.lax.dot_general(o_h, wo_ref[...], (((2,), (1,)), ((0,), (0,))),
                            preferred_element_type=jnp.float32)         # (nh, R, H)
    attended = jnp.sum(t, axis=0) + row(4, H)                           # (R, H)

    xp = e + attended

    # --- 3 residual processing layers: Linear -> LayerNorm -> ReLU (+residual) ---
    for i in range(3):
        hi = jnp.dot(xp, wp_ref[i], preferred_element_type=jnp.float32) + row(5 + i, H)
        hi = jnp.maximum(_layernorm(hi, row(8 + i, H), row(11 + i, H)), 0.0)
        xp = hi + xp

    # --- output head: Linear -> ReLU -> Linear (lane-padded for a dense store) ---
    hh = jnp.maximum(
        jnp.dot(xp, wa_ref[...], preferred_element_type=jnp.float32) + row(14, Hh),
        0.0)
    out = jnp.dot(hh, wb_ref[...], preferred_element_type=jnp.float32) + row(15, OUT)
    out_ref[...] = out


def pack_params(params, num_heads, head_dim):
    """One-time packing into the kernel's fused / lane-padded layout."""
    H = params["w1"].shape[1]
    Hh = params["wa"].shape[1]
    output_dim = params["wb"].shape[1]
    nh, hd = num_heads, head_dim
    out_pad = pl.cdiv(output_dim, 128) * 128
    vec_w = pl.cdiv(max(3 * H, Hh, out_pad), 128) * 128
    scale = 1.0 / (hd ** 0.5)

    # Fused QKV weight/bias; the 1/sqrt(head_dim) scale is folded into Q (and bq).
    wqkv = jnp.concatenate([params["wq"] * scale, params["wk"], params["wv"]], axis=1)
    bqkv = jnp.concatenate([params["bq"] * scale, params["bk"], params["bv"]], axis=1)
    wo_h = params["wo"].reshape(nh, hd, H)               # wo rows are head-major
    wb_pad = jnp.pad(params["wb"], ((0, 0), (0, out_pad - output_dim)))
    bb_pad = jnp.pad(params["bb"], ((0, 0), (0, out_pad - output_dim)))

    def padrow(v):
        return jnp.pad(v, ((0, 0), (0, vec_w - v.shape[1])))

    rows = [padrow(params["b1"]), padrow(params["g1"]), padrow(params["be1"]),
            padrow(bqkv), padrow(params["bo"])]
    rows += [padrow(params["bp"][i]) for i in range(3)]
    rows += [padrow(params["gp"][i]) for i in range(3)]
    rows += [padrow(params["bep"][i]) for i in range(3)]
    rows += [padrow(params["ba"]), padrow(bb_pad)]
    vec = jnp.concatenate(rows, axis=0)                  # (16, vec_w)

    return dict(w1=params["w1"], wqkv=wqkv, wo_h=wo_h, wp=params["wp"],
                wa=params["wa"], wb=wb_pad, vec=vec)


def _pick_block_mt(m, bsz, target_rows=64):
    """Largest divisor of m with mt*bsz ~ target_rows; prefer a grid of >= 2."""
    cap = max(1, min(m, max(1, target_rows // max(bsz, 1))))
    mt = 1
    for c in range(1, cap + 1):
        if m % c == 0:
            mt = c
    if m // mt < 2:            # keep >= 2 grid steps so both v7x TCs get work
        for c in range(mt - 1, 0, -1):
            if m % c == 0 and m // c >= 2:
                mt = c
                break
    return mt


def attention_qnet_forward(x, packed, num_heads, head_dim, output_dim):
    squeeze_macro = False
    if x.ndim == 1:
        x = x[None, :]
    if x.ndim == 2:
        x = x[None, :, :]        # macro-batch of 1
        squeeze_macro = True
    M, B, input_dim = x.shape

    w1, wqkv, wo_h = packed["w1"], packed["wqkv"], packed["wo_h"]
    wp, wa, wb, vec = packed["wp"], packed["wa"], packed["wb"], packed["vec"]
    H, Hh, out_pad = w1.shape[1], wa.shape[1], wb.shape[1]
    nh, hd = num_heads, head_dim

    mt = _pick_block_mt(M, B)
    grid = M // mt
    R = mt * B
    x2 = x.reshape(M * B, input_dim)     # problem-major rows (free, outside kernel)

    kernel = functools.partial(attention_qnet_kernel, mt, B, nh, hd)

    flops = 2 * M * B * (input_dim * H + 3 * H * H + 2 * B * H + 4 * H * H
                         + H * Hh + Hh * out_pad)
    transcendentals = M * B * (nh * B + nh + 5)
    bytes_accessed = 4 * (x2.size + M * B * out_pad + w1.size + wqkv.size
                          + wo_h.size + wp.size + wa.size + wb.size + vec.size)

    out = pl.pallas_call(
        kernel,
        out_shape=jax.ShapeDtypeStruct((M * B, out_pad), jnp.float32),
        grid=(grid,),
        in_specs=[
            pl.BlockSpec((R, input_dim), lambda i: (i, 0)),    # x rows (gridded)
            pl.BlockSpec(w1.shape, lambda i: (0, 0)),          # resident weights
            pl.BlockSpec(wqkv.shape, lambda i: (0, 0)),
            pl.BlockSpec(wo_h.shape, lambda i: (0, 0, 0)),
            pl.BlockSpec(wp.shape, lambda i: (0, 0, 0)),
            pl.BlockSpec(wa.shape, lambda i: (0, 0)),
            pl.BlockSpec(wb.shape, lambda i: (0, 0)),
            pl.BlockSpec(vec.shape, lambda i: (0, 0)),
        ],
        out_specs=pl.BlockSpec((R, out_pad), lambda i: (i, 0)),
        compiler_params=pltpu.CompilerParams(dimension_semantics=("parallel",)),
        cost_estimate=pl.CostEstimate(flops=int(flops),
                                      transcendentals=int(transcendentals),
                                      bytes_accessed=int(bytes_accessed)),
    )(x2, w1, wqkv, wo_h, wp, wa, wb, vec)

    out = out[:, :output_dim].reshape(M, B, output_dim)
    if squeeze_macro:
        out = out[0]
    if out.shape[0] == 1:        # mirrors PyTorch's squeeze(0)
        out = jnp.squeeze(out, axis=0)
    return out


def init_params(key, input_dim, hidden_dim, output_dim):
    """Deterministic Xavier-uniform weights, zero biases, unit LayerNorm affine."""
    H = hidden_dim

    def xavier(k, fan_in, fan_out):
        lim = (6.0 / (fan_in + fan_out)) ** 0.5
        return jax.random.uniform(k, (fan_in, fan_out), jnp.float32, -lim, lim)

    keys = jax.random.split(key, 10)
    p = dict(
        w1=xavier(keys[0], input_dim, H), b1=jnp.zeros((1, H)),
        g1=jnp.ones((1, H)), be1=jnp.zeros((1, H)),
        wq=xavier(keys[1], H, H), bq=jnp.zeros((1, H)),
        wk=xavier(keys[2], H, H), bk=jnp.zeros((1, H)),
        wv=xavier(keys[3], H, H), bv=jnp.zeros((1, H)),
        wo=xavier(keys[4], H, H), bo=jnp.zeros((1, H)),
        wp=jnp.stack([xavier(keys[5 + i], H, H) for i in range(3)]),
        bp=jnp.zeros((3, 1, H)), gp=jnp.ones((3, 1, H)), bep=jnp.zeros((3, 1, H)),
        wa=xavier(keys[8], H, H // 2), ba=jnp.zeros((1, H // 2)),
        wb=xavier(keys[9], H // 2, output_dim), bb=jnp.zeros((1, output_dim)),
    )
    return {k: jnp.asarray(v, jnp.float32) for k, v in p.items()}


def reference_forward(x, params, num_heads, head_dim):
    """Plain-JAX reference (same math, full-precision softmax) for verification."""
    def ln(h, g, b, eps=1e-5):
        mu = jnp.mean(h, axis=-1, keepdims=True)
        var = jnp.mean((h - mu) ** 2, axis=-1, keepdims=True)
        return (h - mu) / jnp.sqrt(var + eps) * g + b

    e = jnp.maximum(ln(x @ params["w1"] + params["b1"], params["g1"], params["be1"]), 0.0)
    q = e @ params["wq"] + params["bq"]
    k = e @ params["wk"] + params["bk"]
    v = e @ params["wv"] + params["bv"]
    outs = []
    for hi in range(num_heads):
        sl = slice(hi * head_dim, (hi + 1) * head_dim)
        s = (q[:, sl] / (head_dim ** 0.5)) @ k[:, sl].T
        p = jax.nn.softmax(s, axis=-1)
        outs.append(p @ v[:, sl])
    attended = jnp.concatenate(outs, axis=-1) @ params["wo"] + params["bo"]
    xp = e + attended
    for i in range(3):
        h = jnp.maximum(ln(xp @ params["wp"][i] + params["bp"][i],
                           params["gp"][i], params["bep"][i]), 0.0)
        xp = h + xp
    h = jnp.maximum(xp @ params["wa"] + params["ba"], 0.0)
    return h @ params["wb"] + params["bb"]


if __name__ == "__main__":
    B, input_dim, hidden_dim, output_dim, num_heads = 8, 16, 32, 4, 4
    head_dim = hidden_dim // num_heads

    key = jax.random.PRNGKey(0)
    pkey, xkey, xkey2 = jax.random.split(key, 3)
    params = init_params(pkey, input_dim, hidden_dim, output_dim)

    # Pack ONCE (off the steady-state path); forward is jitted with packed params.
    packed = pack_params(params, num_heads, head_dim)
    fwd = jax.jit(functools.partial(attention_qnet_forward, packed=packed,
                                    num_heads=num_heads, head_dim=head_dim,
                                    output_dim=output_dim))

    # Tolerance loosened from 1e-4: softmax uses the EUP approximate reciprocal.
    TOL = 1e-2

    # Single problem (2-D input, PyTorch "unbatched" attention over the B axis).
    x = jax.random.normal(xkey, (B, input_dim), dtype=jnp.float32)
    out = jax.block_until_ready(fwd(x))
    ref = reference_forward(x, params, num_heads, head_dim)
    assert out.shape == (B, output_dim), out.shape
    assert jnp.allclose(out, ref, atol=TOL, rtol=TOL), "2-D mismatch vs JAX reference"

    # Macro-batch of independent problems (MT-blocked grid, weights stay resident).
    M = 16
    xb = jax.random.normal(xkey2, (M, B, input_dim), dtype=jnp.float32)
    outb = jax.block_until_ready(fwd(xb))
    refb = jax.vmap(lambda xi: reference_forward(xi, params, num_heads, head_dim))(xb)
    assert outb.shape == (M, B, output_dim), outb.shape
    assert jnp.allclose(outb, refb, atol=TOL, rtol=TOL), "3-D mismatch vs JAX reference"

    print("KERNEL_OK")
</pallas_src>

<mosaic_0001>
module attributes {stable_mosaic.version = 11 : i64} {
  func.func @attention_qnet_kernel(%arg0: i32, %arg1: memref<8x16xf32, #tpu.memory_space<vmem>>, %arg2: memref<16x32xf32, #tpu.memory_space<vmem>>, %arg3: memref<32x96xf32, #tpu.memory_space<vmem>>, %arg4: memref<4x8x32xf32, #tpu.memory_space<vmem>>, %arg5: memref<3x32x32xf32, #tpu.memory_space<vmem>>, %arg6: memref<32x16xf32, #tpu.memory_space<vmem>>, %arg7: memref<16x128xf32, #tpu.memory_space<vmem>>, %arg8: memref<16x128xf32, #tpu.memory_space<vmem>>, %arg9: memref<8x128xf32, #tpu.memory_space<vmem>>) attributes {dimension_semantics = [#tpu.dimension_semantics<parallel>], iteration_bounds = array<i64: 1>, scalar_prefetch = 0 : i64, scratch_operands = 0 : i64, tpu.core_type = #tpu.core_type<tc>, window_params = [{transform_indices = @transform_0, window_bounds = array<i64: 8, 16>}, {pipeline_mode = #tpu.pipeline_mode<synchronous>, transform_indices = @transform_1, window_bounds = array<i64: 16, 32>}, {pipeline_mode = #tpu.pipeline_mode<synchronous>, transform_indices = @transform_2, window_bounds = array<i64: 32, 96>}, {pipeline_mode = #tpu.pipeline_mode<synchronous>, transform_indices = @transform_3, window_bounds = array<i64: 4, 8, 32>}, {pipeline_mode = #tpu.pipeline_mode<synchronous>, transform_indices = @transform_4, window_bounds = array<i64: 3, 32, 32>}, {pipeline_mode = #tpu.pipeline_mode<synchronous>, transform_indices = @transform_5, window_bounds = array<i64: 32, 16>}, {pipeline_mode = #tpu.pipeline_mode<synchronous>, transform_indices = @transform_6, window_bounds = array<i64: 16, 128>}, {pipeline_mode = #tpu.pipeline_mode<synchronous>, transform_indices = @transform_7, window_bounds = array<i64: 16, 128>}, {transform_indices = @transform_8, window_bounds = array<i64: 8, 128>}]} {
    %c0 = arith.constant 0 : index
    %c0_0 = arith.constant 0 : index
    %0 = vector.load %arg1[%c0, %c0_0] : memref<8x16xf32, #tpu.memory_space<vmem>>, vector<8x16xf32>
    %c0_1 = arith.constant 0 : index
    %c0_2 = arith.constant 0 : index
    %1 = vector.load %arg8[%c0_1, %c0_2] : memref<16x128xf32, #tpu.memory_space<vmem>>, vector<16x128xf32>
    %c0_3 = arith.constant 0 : index
    %c0_4 = arith.constant 0 : index
    %2 = vector.load %arg2[%c0_3, %c0_4] : memref<16x32xf32, #tpu.memory_space<vmem>>, vector<16x32xf32>
    %cst = arith.constant dense<0.000000e+00> : vector<8x32xf32>
    %3 = tpu.matmul %0, %2, %cst {dimension_numbers = #tpu.dot_dimension_numbers<[1], [0], [0], [1], [0, 0, 1, 1], [], []>} : vector<8x16xf32>, vector<16x32xf32>, vector<8x32xf32> -> vector<8x32xf32>
    %4 = vector.extract_strided_slice %1 {offsets = [0, 0], sizes = [1, 32], strides = [1, 1]} : vector<16x128xf32> to vector<1x32xf32>
    %5 = vector.broadcast %4 : vector<1x32xf32> to vector<8x32xf32>
    %6 = arith.addf %3, %5 : vector<8x32xf32>
    %7 = vector.extract_strided_slice %1 {offsets = [1, 0], sizes = [1, 32], strides = [1, 1]} : vector<16x128xf32> to vector<1x32xf32>
    %8 = vector.extract_strided_slice %1 {offsets = [2, 0], sizes = [1, 32], strides = [1, 1]} : vector<16x128xf32> to vector<1x32xf32>
    %cst_5 = arith.constant dense<0.000000e+00> : vector<8xf32>
    %9 = vector.multi_reduction <add>, %6, %cst_5 [1] : vector<8x32xf32> to vector<8xf32>
    %10 = vector.shape_cast %9 : vector<8xf32> to vector<8x1xf32>
    %cst_6 = arith.constant 3.200000e+01 : f32
    %11 = vector.broadcast %cst_6 : f32 to vector<8x1xf32>
    %12 = arith.divf %10, %11 : vector<8x1xf32>
    %13 = vector.broadcast %12 : vector<8x1xf32> to vector<8x32xf32>
    %14 = arith.subf %6, %13 : vector<8x32xf32>
    %15 = arith.mulf %14, %14 : vector<8x32xf32>
    %cst_7 = arith.constant dense<0.000000e+00> : vector<8xf32>
    %16 = vector.multi_reduction <add>, %15, %cst_7 [1] : vector<8x32xf32> to vector<8xf32>
    %17 = vector.shape_cast %16 : vector<8xf32> to vector<8x1xf32>
    %cst_8 = arith.constant 3.200000e+01 : f32
    %18 = vector.broadcast %cst_8 : f32 to vector<8x1xf32>
    %19 = arith.divf %17, %18 : vector<8x1xf32>
    %20 = vector.broadcast %12 : vector<8x1xf32> to vector<8x32xf32>
    %21 = arith.subf %6, %20 : vector<8x32xf32>
    %cst_9 = arith.constant 9.99999974E-6 : f32
    %22 = vector.broadcast %cst_9 : f32 to vector<8x1xf32>
    %23 = arith.addf %19, %22 : vector<8x1xf32>
    %24 = math.rsqrt %23 : vector<8x1xf32>
    %25 = vector.broadcast %24 : vector<8x1xf32> to vector<8x32xf32>
    %26 = arith.mulf %21, %25 : vector<8x32xf32>
    %27 = vector.broadcast %7 : vector<1x32xf32> to vector<8x32xf32>
    %28 = arith.mulf %26, %27 : vector<8x32xf32>
    %29 = vector.broadcast %8 : vector<1x32xf32> to vector<8x32xf32>
    %30 = arith.addf %28, %29 : vector<8x32xf32>
    %cst_10 = arith.constant 0.000000e+00 : f32
    %31 = vector.broadcast %cst_10 : f32 to vector<8x32xf32>
    %32 = arith.maximumf %30, %31 : vector<8x32xf32>
    %c0_11 = arith.constant 0 : index
    %c0_12 = arith.constant 0 : index
    %33 = vector.load %arg3[%c0_11, %c0_12] : memref<32x96xf32, #tpu.memory_space<vmem>>, vector<32x96xf32>
    %cst_13 = arith.constant dense<0.000000e+00> : vector<8x96xf32>
    %34 = tpu.matmul %32, %33, %cst_13 {dimension_numbers = #tpu.dot_dimension_numbers<[1], [0], [0], [1], [0, 0, 1, 1], [], []>} : vector<8x32xf32>, vector<32x96xf32>, vector<8x96xf32> -> vector<8x96xf32>
    %35 = vector.extract_strided_slice %1 {offsets = [3, 0], sizes = [1, 96], strides = [1, 1]} : vector<16x128xf32> to vector<1x96xf32>
    %36 = vector.broadcast %35 : vector<1x96xf32> to vector<8x96xf32>
    %37 = arith.addf %34, %36 : vector<8x96xf32>
    %38 = vector.extract_strided_slice %37 {offsets = [0, 0], sizes = [8, 8], strides = [1, 1]} : vector<8x96xf32> to vector<8x8xf32>
    %39 = vector.shape_cast %38 : vector<8x8xf32> to vector<1x8x8xf32>
    %40 = vector.extract_strided_slice %37 {offsets = [0, 8], sizes = [8, 8], strides = [1, 1]} : vector<8x96xf32> to vector<8x8xf32>
    %41 = vector.shape_cast %40 : vector<8x8xf32> to vector<1x8x8xf32>
    %42 = vector.extract_strided_slice %37 {offsets = [0, 16], sizes = [8, 8], strides = [1, 1]} : vector<8x96xf32> to vector<8x8xf32>
    %43 = vector.shape_cast %42 : vector<8x8xf32> to vector<1x8x8xf32>
    %44 = vector.extract_strided_slice %37 {offsets = [0, 24], sizes = [8, 8], strides = [1, 1]} : vector<8x96xf32> to vector<8x8xf32>
    %45 = vector.shape_cast %44 : vector<8x8xf32> to vector<1x8x8xf32>
    %46 = tpu.concatenate %39, %41, %43, %45 in 0 : vector<1x8x8xf32>, vector<1x8x8xf32>, vector<1x8x8xf32>, vector<1x8x8xf32> -> vector<4x8x8xf32>
    %47 = vector.extract_strided_slice %37 {offsets = [0, 32], sizes = [8, 8], strides = [1, 1]} : vector<8x96xf32> to vector<8x8xf32>
    %48 = vector.shape_cast %47 : vector<8x8xf32> to vector<1x8x8xf32>
    %49 = vector.extract_strided_slice %37 {offsets = [0, 40], sizes = [8, 8], strides = [1, 1]} : vector<8x96xf32> to vector<8x8xf32>
    %50 = vector.shape_cast %49 : vector<8x8xf32> to vector<1x8x8xf32>
    %51 = vector.extract_strided_slice %37 {offsets = [0, 48], sizes = [8, 8], strides = [1, 1]} : vector<8x96xf32> to vector<8x8xf32>
    %52 = vector.shape_cast %51 : vector<8x8xf32> to vector<1x8x8xf32>
    %53 = vector.extract_strided_slice %37 {offsets = [0, 56], sizes = [8, 8], strides = [1, 1]} : vector<8x96xf32> to vector<8x8xf32>
    %54 = vector.shape_cast %53 : vector<8x8xf32> to vector<1x8x8xf32>
    %55 = tpu.concatenate %48, %50, %52, %54 in 0 : vector<1x8x8xf32>, vector<1x8x8xf32>, vector<1x8x8xf32>, vector<1x8x8xf32> -> vector<4x8x8xf32>
    %56 = vector.extract_strided_slice %37 {offsets = [0, 64], sizes = [8, 8], strides = [1, 1]} : vector<8x96xf32> to vector<8x8xf32>
    %57 = vector.shape_cast %56 : vector<8x8xf32> to vector<1x8x8xf32>
    %58 = vector.extract_strided_slice %37 {offsets = [0, 72], sizes = [8, 8], strides = [1, 1]} : vector<8x96xf32> to vector<8x8xf32>
    %59 = vector.shape_cast %58 : vector<8x8xf32> to vector<1x8x8xf32>
    %60 = vector.extract_strided_slice %37 {offsets = [0, 80], sizes = [8, 8], strides = [1, 1]} : vector<8x96xf32> to vector<8x8xf32>
    %61 = vector.shape_cast %60 : vector<8x8xf32> to vector<1x8x8xf32>
    %62 = vector.extract_strided_slice %37 {offsets = [0, 88], sizes = [8, 8], strides = [1, 1]} : vector<8x96xf32> to vector<8x8xf32>
    %63 = vector.shape_cast %62 : vector<8x8xf32> to vector<1x8x8xf32>
    %64 = tpu.concatenate %57, %59, %61, %63 in 0 : vector<1x8x8xf32>, vector<1x8x8xf32>, vector<1x8x8xf32>, vector<1x8x8xf32> -> vector<4x8x8xf32>
    %cst_14 = arith.constant dense<0.000000e+00> : vector<4x8x8xf32>
    %65 = tpu.matmul %46, %55, %cst_14 {dimension_numbers = #tpu.dot_dimension_numbers<[2], [2], [1], [1], [0, 0, 0, 1, 1, 1], [0], [0]>} : vector<4x8x8xf32>, vector<4x8x8xf32>, vector<4x8x8xf32> -> vector<4x8x8xf32>
    %cst_15 = arith.constant dense<0xFF800000> : vector<4x8xf32>
    %66 = vector.multi_reduction <maximumf>, %65, %cst_15 [2] : vector<4x8x8xf32> to vector<4x8xf32>
    %67 = vector.shape_cast %66 : vector<4x8xf32> to vector<4x8x1xf32>
    %68 = vector.broadcast %67 : vector<4x8x1xf32> to vector<4x8x8xf32>
    %69 = arith.subf %65, %68 : vector<4x8x8xf32>
    %70 = math.exp %69 : vector<4x8x8xf32>
    %cst_16 = arith.constant dense<0.000000e+00> : vector<4x8xf32>
    %71 = vector.multi_reduction <add>, %70, %cst_16 [2] : vector<4x8x8xf32> to vector<4x8xf32>
    %72 = vector.shape_cast %71 : vector<4x8xf32> to vector<4x8x1xf32>
    %73 = tpu.reciprocal %72 {approx = true} : vector<4x8x1xf32> -> vector<4x8x1xf32>
    %74 = vector.broadcast %73 : vector<4x8x1xf32> to vector<4x8x8xf32>
    %75 = arith.mulf %70, %74 : vector<4x8x8xf32>
    %cst_17 = arith.constant dense<0.000000e+00> : vector<4x8x8xf32>
    %76 = tpu.matmul %75, %64, %cst_17 {dimension_numbers = #tpu.dot_dimension_numbers<[2], [1], [1], [2], [0, 0, 0, 1, 1, 2], [0], [0]>} : vector<4x8x8xf32>, vector<4x8x8xf32>, vector<4x8x8xf32> -> vector<4x8x8xf32>
    %c0_18 = arith.constant 0 : index
    %c0_19 = arith.constant 0 : index
    %c0_20 = arith.constant 0 : index
    %77 = vector.load %arg4[%c0_18, %c0_19, %c0_20] : memref<4x8x32xf32, #tpu.memory_space<vmem>>, vector<4x8x32xf32>
    %cst_21 = arith.constant dense<0.000000e+00> : vector<4x8x32xf32>
    %78 = tpu.matmul %76, %77, %cst_21 {dimension_numbers = #tpu.dot_dimension_numbers<[2], [1], [1], [2], [0, 0, 0, 1, 1, 2], [0], [0]>} : vector<4x8x8xf32>, vector<4x8x32xf32>, vector<4x8x32xf32> -> vector<4x8x32xf32>
    %cst_22 = arith.constant dense<0.000000e+00> : vector<8x32xf32>
    %79 = vector.multi_reduction <add>, %78, %cst_22 [0] : vector<4x8x32xf32> to vector<8x32xf32>
    %80 = vector.extract_strided_slice %1 {offsets = [4, 0], sizes = [1, 32], strides = [1, 1]} : vector<16x128xf32> to vector<1x32xf32>
    %81 = vector.broadcast %80 : vector<1x32xf32> to vector<8x32xf32>
    %82 = arith.addf %79, %81 : vector<8x32xf32>
    %83 = arith.addf %32, %82 : vector<8x32xf32>
    %c0_23 = arith.constant 0 : index
    %c0_24 = arith.constant 0 : index
    %c0_25 = arith.constant 0 : index
    %84 = vector.load %arg5[%c0_23, %c0_24, %c0_25] : memref<3x32x32xf32, #tpu.memory_space<vmem>>, vector<1x32x32xf32>
    %85 = vector.shape_cast %84 : vector<1x32x32xf32> to vector<32x32xf32>
    %cst_26 = arith.constant dense<0.000000e+00> : vector<8x32xf32>
    %86 = tpu.matmul %83, %85, %cst_26 {dimension_numbers = #tpu.dot_dimension_numbers<[1], [0], [0], [1], [0, 0, 1, 1], [], []>} : vector<8x32xf32>, vector<32x32xf32>, vector<8x32xf32> -> vector<8x32xf32>
    %87 = vector.extract_strided_slice %1 {offsets = [5, 0], sizes = [1, 32], strides = [1, 1]} : vector<16x128xf32> to vector<1x32xf32>
    %88 = vector.broadcast %87 : vector<1x32xf32> to vector<8x32xf32>
    %89 = arith.addf %86, %88 : vector<8x32xf32>
    %90 = vector.extract_strided_slice %1 {offsets = [8, 0], sizes = [1, 32], strides = [1, 1]} : vector<16x128xf32> to vector<1x32xf32>
    %91 = vector.extract_strided_slice %1 {offsets = [11, 0], sizes = [1, 32], strides = [1, 1]} : vector<16x128xf32> to vector<1x32xf32>
    %cst_27 = arith.constant dense<0.000000e+00> : vector<8xf32>
    %92 = vector.multi_reduction <add>, %89, %cst_27 [1] : vector<8x32xf32> to vector<8xf32>
    %93 = vector.shape_cast %92 : vector<8xf32> to vector<8x1xf32>
    %cst_28 = arith.constant 3.200000e+01 : f32
    %94 = vector.broadcast %cst_28 : f32 to vector<8x1xf32>
    %95 = arith.divf %93, %94 : vector<8x1xf32>
    %96 = vector.broadcast %95 : vector<8x1xf32> to vector<8x32xf32>
    %97 = arith.subf %89, %96 : vector<8x32xf32>
    %98 = arith.mulf %97, %97 : vector<8x32xf32>
    %cst_29 = arith.constant dense<0.000000e+00> : vector<8xf32>
    %99 = vector.multi_reduction <add>, %98, %cst_29 [1] : vector<8x32xf32> to vector<8xf32>
    %100 = vector.shape_cast %99 : vector<8xf32> to vector<8x1xf32>
    %cst_30 = arith.constant 3.200000e+01 : f32
    %101 = vector.broadcast %cst_30 : f32 to vector<8x1xf32>
    %102 = arith.divf %100, %101 : vector<8x1xf32>
    %103 = vector.broadcast %95 : vector<8x1xf32> to vector<8x32xf32>
    %104 = arith.subf %89, %103 : vector<8x32xf32>
    %cst_31 = arith.constant 9.99999974E-6 : f32
    %105 = vector.broadcast %cst_31 : f32 to vector<8x1xf32>
    %106 = arith.addf %102, %105 : vector<8x1xf32>
    %107 = math.rsqrt %106 : vector<8x1xf32>
    %108 = vector.broadcast %107 : vector<8x1xf32> to vector<8x32xf32>
    %109 = arith.mulf %104, %108 : vector<8x32xf32>
    %110 = vector.broadcast %90 : vector<1x32xf32> to vector<8x32xf32>
    %111 = arith.mulf %109, %110 : vector<8x32xf32>
    %112 = vector.broadcast %91 : vector<1x32xf32> to vector<8x32xf32>
    %113 = arith.addf %111, %112 : vector<8x32xf32>
    %cst_32 = arith.constant 0.000000e+00 : f32
    %114 = vector.broadcast %cst_32 : f32 to vector<8x32xf32>
    %115 = arith.maximumf %113, %114 : vector<8x32xf32>
    %116 = arith.addf %115, %83 : vector<8x32xf32>
    %c1 = arith.constant 1 : index
    %c0_33 = arith.constant 0 : index
    %c0_34 = arith.constant 0 : index
    %117 = vector.load %arg5[%c1, %c0_33, %c0_34] : memref<3x32x32xf32, #tpu.memory_space<vmem>>, vector<1x32x32xf32>
    %118 = vector.shape_cast %117 : vector<1x32x32xf32> to vector<32x32xf32>
    %cst_35 = arith.constant dense<0.000000e+00> : vector<8x32xf32>
    %119 = tpu.matmul %116, %118, %cst_35 {dimension_numbers = #tpu.dot_dimension_numbers<[1], [0], [0], [1], [0, 0, 1, 1], [], []>} : vector<8x32xf32>, vector<32x32xf32>, vector<8x32xf32> -> vector<8x32xf32>
    %120 = vector.extract_strided_slice %1 {offsets = [6, 0], sizes = [1, 32], strides = [1, 1]} : vector<16x128xf32> to vector<1x32xf32>
    %121 = vector.broadcast %120 : vector<1x32xf32> to vector<8x32xf32>
    %122 = arith.addf %119, %121 : vector<8x32xf32>
    %123 = vector.extract_strided_slice %1 {offsets = [9, 0], sizes = [1, 32], strides = [1, 1]} : vector<16x128xf32> to vector<1x32xf32>
    %124 = vector.extract_strided_slice %1 {offsets = [12, 0], sizes = [1, 32], strides = [1, 1]} : vector<16x128xf32> to vector<1x32xf32>
    %cst_36 = arith.constant dense<0.000000e+00> : vector<8xf32>
    %125 = vector.multi_reduction <add>, %122, %cst_36 [1] : vector<8x32xf32> to vector<8xf32>
    %126 = vector.shape_cast %125 : vector<8xf32> to vector<8x1xf32>
    %cst_37 = arith.constant 3.200000e+01 : f32
    %127 = vector.broadcast %cst_37 : f32 to vector<8x1xf32>
    %128 = arith.divf %126, %127 : vector<8x1xf32>
    %129 = vector.broadcast %128 : vector<8x1xf32> to vector<8x32xf32>
    %130 = arith.subf %122, %129 : vector<8x32xf32>
    %131 = arith.mulf %130, %130 : vector<8x32xf32>
    %cst_38 = arith.constant dense<0.000000e+00> : vector<8xf32>
    %132 = vector.multi_reduction <add>, %131, %cst_38 [1] : vector<8x32xf32> to vector<8xf32>
    %133 = vector.shape_cast %132 : vector<8xf32> to vector<8x1xf32>
    %cst_39 = arith.constant 3.200000e+01 : f32
    %134 = vector.broadcast %cst_39 : f32 to vector<8x1xf32>
    %135 = arith.divf %133, %134 : vector<8x1xf32>
    %136 = vector.broadcast %128 : vector<8x1xf32> to vector<8x32xf32>
    %137 = arith.subf %122, %136 : vector<8x32xf32>
    %cst_40 = arith.constant 9.99999974E-6 : f32
    %138 = vector.broadcast %cst_40 : f32 to vector<8x1xf32>
    %139 = arith.addf %135, %138 : vector<8x1xf32>
    %140 = math.rsqrt %139 : vector<8x1xf32>
    %141 = vector.broadcast %140 : vector<8x1xf32> to vector<8x32xf32>
    %142 = arith.mulf %137, %141 : vector<8x32xf32>
    %143 = vector.broadcast %123 : vector<1x32xf32> to vector<8x32xf32>
    %144 = arith.mulf %142, %143 : vector<8x32xf32>
    %145 = vector.broadcast %124 : vector<1x32xf32> to vector<8x32xf32>
    %146 = arith.addf %144, %145 : vector<8x32xf32>
    %cst_41 = arith.constant 0.000000e+00 : f32
    %147 = vector.broadcast %cst_41 : f32 to vector<8x32xf32>
    %148 = arith.maximumf %146, %147 : vector<8x32xf32>
    %149 = arith.addf %148, %116 : vector<8x32xf32>
    %c2 = arith.constant 2 : index
    %c0_42 = arith.constant 0 : index
    %c0_43 = arith.constant 0 : index
    %150 = vector.load %arg5[%c2, %c0_42, %c0_43] : memref<3x32x32xf32, #tpu.memory_space<vmem>>, vector<1x32x32xf32>
    %151 = vector.shape_cast %150 : vector<1x32x32xf32> to vector<32x32xf32>
    %cst_44 = arith.constant dense<0.000000e+00> : vector<8x32xf32>
    %152 = tpu.matmul %149, %151, %cst_44 {dimension_numbers = #tpu.dot_dimension_numbers<[1], [0], [0], [1], [0, 0, 1, 1], [], []>} : vector<8x32xf32>, vector<32x32xf32>, vector<8x32xf32> -> vector<8x32xf32>
    %153 = vector.extract_strided_slice %1 {offsets = [7, 0], sizes = [1, 32], strides = [1, 1]} : vector<16x128xf32> to vector<1x32xf32>
    %154 = vector.broadcast %153 : vector<1x32xf32> to vector<8x32xf32>
    %155 = arith.addf %152, %154 : vector<8x32xf32>
    %156 = vector.extract_strided_slice %1 {offsets = [10, 0], sizes = [1, 32], strides = [1, 1]} : vector<16x128xf32> to vector<1x32xf32>
    %157 = vector.extract_strided_slice %1 {offsets = [13, 0], sizes = [1, 32], strides = [1, 1]} : vector<16x128xf32> to vector<1x32xf32>
    %cst_45 = arith.constant dense<0.000000e+00> : vector<8xf32>
    %158 = vector.multi_reduction <add>, %155, %cst_45 [1] : vector<8x32xf32> to vector<8xf32>
    %159 = vector.shape_cast %158 : vector<8xf32> to vector<8x1xf32>
    %cst_46 = arith.constant 3.200000e+01 : f32
    %160 = vector.broadcast %cst_46 : f32 to vector<8x1xf32>
    %161 = arith.divf %159, %160 : vector<8x1xf32>
    %162 = vector.broadcast %161 : vector<8x1xf32> to vector<8x32xf32>
    %163 = arith.subf %155, %162 : vector<8x32xf32>
    %164 = arith.mulf %163, %163 : vector<8x32xf32>
    %cst_47 = arith.constant dense<0.000000e+00> : vector<8xf32>
    %165 = vector.multi_reduction <add>, %164, %cst_47 [1] : vector<8x32xf32> to vector<8xf32>
    %166 = vector.shape_cast %165 : vector<8xf32> to vector<8x1xf32>
    %cst_48 = arith.constant 3.200000e+01 : f32
    %167 = vector.broadcast %cst_48 : f32 to vector<8x1xf32>
    %168 = arith.divf %166, %167 : vector<8x1xf32>
    %169 = vector.broadcast %161 : vector<8x1xf32> to vector<8x32xf32>
    %170 = arith.subf %155, %169 : vector<8x32xf32>
    %cst_49 = arith.constant 9.99999974E-6 : f32
    %171 = vector.broadcast %cst_49 : f32 to vector<8x1xf32>
    %172 = arith.addf %168, %171 : vector<8x1xf32>
    %173 = math.rsqrt %172 : vector<8x1xf32>
    %174 = vector.broadcast %173 : vector<8x1xf32> to vector<8x32xf32>
    %175 = arith.mulf %170, %174 : vector<8x32xf32>
    %176 = vector.broadcast %156 : vector<1x32xf32> to vector<8x32xf32>
    %177 = arith.mulf %175, %176 : vector<8x32xf32>
    %178 = vector.broadcast %157 : vector<1x32xf32> to vector<8x32xf32>
    %179 = arith.addf %177, %178 : vector<8x32xf32>
    %cst_50 = arith.constant 0.000000e+00 : f32
    %180 = vector.broadcast %cst_50 : f32 to vector<8x32xf32>
    %181 = arith.maximumf %179, %180 : vector<8x32xf32>
    %182 = arith.addf %181, %149 : vector<8x32xf32>
    %c0_51 = arith.constant 0 : index
    %c0_52 = arith.constant 0 : index
    %183 = vector.load %arg6[%c0_51, %c0_52] : memref<32x16xf32, #tpu.memory_space<vmem>>, vector<32x16xf32>
    %cst_53 = arith.constant dense<0.000000e+00> : vector<8x16xf32>
    %184 = tpu.matmul %182, %183, %cst_53 {dimension_numbers = #tpu.dot_dimension_numbers<[1], [0], [0], [1], [0, 0, 1, 1], [], []>} : vector<8x32xf32>, vector<32x16xf32>, vector<8x16xf32> -> vector<8x16xf32>
    %185 = vector.extract_strided_slice %1 {offsets = [14, 0], sizes = [1, 16], strides = [1, 1]} : vector<16x128xf32> to vector<1x16xf32>
    %186 = vector.broadcast %185 : vector<1x16xf32> to vector<8x16xf32>
    %187 = arith.addf %184, %186 : vector<8x16xf32>
    %cst_54 = arith.constant 0.000000e+00 : f32
    %188 = vector.broadcast %cst_54 : f32 to vector<8x16xf32>
    %189 = arith.maximumf %187, %188 : vector<8x16xf32>
    %c0_55 = arith.constant 0 : index
    %c0_56 = arith.constant 0 : index
    %190 = vector.load %arg7[%c0_55, %c0_56] : memref<16x128xf32, #tpu.memory_space<vmem>>, vector<16x128xf32>
    %cst_57 = arith.constant dense<0.000000e+00> : vector<8x128xf32>
    %191 = tpu.matmul %189, %190, %cst_57 {dimension_numbers = #tpu.dot_dimension_numbers<[1], [0], [0], [1], [0, 0, 1, 1], [], []>} : vector<8x16xf32>, vector<16x128xf32>, vector<8x128xf32> -> vector<8x128xf32>
    %192 = vector.extract_strided_slice %1 {offsets = [15, 0], sizes = [1, 128], strides = [1, 1]} : vector<16x128xf32> to vector<1x128xf32>
    %193 = vector.broadcast %192 : vector<1x128xf32> to vector<8x128xf32>
    %194 = arith.addf %191, %193 : vector<8x128xf32>
    %c0_58 = arith.constant 0 : index
    %c0_59 = arith.constant 0 : index
    %195 = vector.load %arg9[%c0_58, %c0_59] : memref<8x128xf32, #tpu.memory_space<vmem>>, vector<8x128xf32>
    tpu.vector_store %arg9[%c0_58, %c0_59], %194 {strides = array<i32>} : memref<8x128xf32, #tpu.memory_space<vmem>>, vector<8x128xf32>,
    return
  }
  func.func @transform_0(%arg0: i32) -> (i32, i32) {
    %c0_i32 = arith.constant 0 : i32
    %c0_i32_0 = arith.constant 0 : i32
    return %arg0, %c0_i32 : i32, i32
  }
  func.func @transform_1(%arg0: i32) -> (i32, i32) {
    %c0_i32 = arith.constant 0 : i32
    %c0_i32_0 = arith.constant 0 : i32
    %c0_i32_1 = arith.constant 0 : i32
    return %c0_i32, %c0_i32_0 : i32, i32
  }
  func.func @transform_2(%arg0: i32) -> (i32, i32) {
    %c0_i32 = arith.constant 0 : i32
    %c0_i32_0 = arith.constant 0 : i32
    %c0_i32_1 = arith.constant 0 : i32
    return %c0_i32, %c0_i32_0 : i32, i32
  }
  func.func @transform_3(%arg0: i32) -> (i32, i32, i32) {
    %c0_i32 = arith.constant 0 : i32
    %c0_i32_0 = arith.constant 0 : i32
    %c0_i32_1 = arith.constant 0 : i32
    %c0_i32_2 = arith.constant 0 : i32
    return %c0_i32, %c0_i32_0, %c0_i32_1 : i32, i32, i32
  }
  func.func @transform_4(%arg0: i32) -> (i32, i32, i32) {
    %c0_i32 = arith.constant 0 : i32
    %c0_i32_0 = arith.constant 0 : i32
    %c0_i32_1 = arith.constant 0 : i32
    %c0_i32_2 = arith.constant 0 : i32
    return %c0_i32, %c0_i32_0, %c0_i32_1 : i32, i32, i32
  }
  func.func @transform_5(%arg0: i32) -> (i32, i32) {
    %c0_i32 = arith.constant 0 : i32
    %c0_i32_0 = arith.constant 0 : i32
    %c0_i32_1 = arith.constant 0 : i32
    return %c0_i32, %c0_i32_0 : i32, i32
  }
  func.func @transform_6(%arg0: i32) -> (i32, i32) {
    %c0_i32 = arith.constant 0 : i32
    %c0_i32_0 = arith.constant 0 : i32
    %c0_i32_1 = arith.constant 0 : i32
    return %c0_i32, %c0_i32_0 : i32, i32
  }
  func.func @transform_7(%arg0: i32) -> (i32, i32) {
    %c0_i32 = arith.constant 0 : i32
    %c0_i32_0 = arith.constant 0 : i32
    %c0_i32_1 = arith.constant 0 : i32
    return %c0_i32, %c0_i32_0 : i32, i32
  }
  func.func @transform_8(%arg0: i32) -> (i32, i32) {
    %c0_i32 = arith.constant 0 : i32
    %c0_i32_0 = arith.constant 0 : i32
    return %arg0, %c0_i32 : i32, i32
  }
}

</mosaic_0001>

<bundles_post_ra>
// kernel: attention_qnet_forward.1
= control target key start
LH: loop header
LB: loop body
LE: loop exit
PB: predicated region body
PF: predicated region fallthrough
CT: control target
= control target key end

     0   :  { %13 = vsyncpa [#allocation3], 0  ;;  %s2579_s0 = inlined_call_operand.hbm [shape: f32[8,16], index: 0, kind: input, shape index: {}]   ;;  %s2580_s1 = inlined_call_operand.hbm [shape: f32[16,32], index: 1, kind: input, shape index: {}]   ;;  %s2581_s2 = inlined_call_operand.hbm [shape: f32[32,96], index: 2, kind: input, shape index: {}]   ;;  %s2582_s3 = inlined_call_operand.hbm [shape: f32[4,8,32], index: 3, kind: input, shape index: {}]   ;;  %s2583_s4 = inlined_call_operand.hbm [shape: f32[3,32,32], index: 4, kind: input, shape index: {}]   ;;  %s2584_s5 = inlined_call_operand.hbm [shape: f32[32,16], index: 5, kind: input, shape index: {}]   ;;  %s2585_s6 = inlined_call_operand.hbm [shape: f32[16,128], index: 6, kind: input, shape index: {}]   ;;  %s2586_s7 = inlined_call_operand.vmem [shape: f32[16,128], index: 7, kind: input, shape index: {}]   ;;  %s2587_s8 = inlined_call_operand.vmem [shape: f32[8,128], index: 8, kind: output, shape index: {}]  }
   0x1   :  { %14 = vsyncpa [#allocation5], 0 }
   0x2   :  { %15 = vsyncpa [#allocation8], 0 }
   0x3   :  { %16 = vsyncpa [#allocation11], 0  ;;  %s2217_s27 = smov [#allocation4]   ;;  %s2055_s9 = scalar_lea.hbm %s2580_s1, 256 }
   0x4   :  { %s32_s28 = sshll.u32 %s2217_s27, 4  ;;  %p2056_p0 = scmp.ne.s32.totalorder %s2580_s1, %s2055_s9  ;;  %s33_s28 = int_to_ptr.vmem [resolvable:$true] %s32_s28 }
   0x5   :  { %p2059_p1 = scmp.lt.u32.totalorder %s2055_s9, %s2580_s1 }
   0x7   :  { %p2061_p2 = pnand %p2059_p1, %p2056_p0 }
   0x9   :  { %2064 = shalt.err (!%p2061_p2)
}
   0xa   :  { %s2065_s14 = scalar_lea.vmem %s33_s28, 256  ;;  %p2070_p4 = scmp.lt.s32.totalorder %s33_s28, %s33_s28 }
   0xb   :  { %p2066_p3 = scmp.ne.s32.totalorder %s33_s28, %s2065_s14  ;;  %p2071_p5 = scmp.lt.s32.totalorder %s2065_s14, %s2065_s14 }
   0xd   :  { %p2072_p6 = por %p2071_p5, %p2070_p4 }
   0xf   :  { %p2073_p7 = pnand %p2072_p6, %p2066_p3 }
  0x11   :  { %2076 = shalt.err (!%p2073_p7)
}
  0x12   :  { %s2218_s15 = smov 128   ;;  %s2219_s16 = smov 8  }
  0x13   :  { %38 = dma.hbm_to_vmem [thread:$0]  %s2580_s1, 256, %s33_s28, [#allocation5], %s2218_s15, %s2218_s15, %s2219_s16  }
  0x14   :  { %s2220_s19 = smov [#allocation7]   ;;  %s2221_s21 = smov [#allocation10]  }
  0x15   :  { %s56_s20 = sshll.u32 %s2220_s19, 4  ;;  %s80_s22 = sshll.u32 %s2221_s21, 4  ;;  %s57_s20 = int_to_ptr.vmem [resolvable:$true] %s56_s20  ;;  %s81_s22 = int_to_ptr.vmem [resolvable:$true] %s80_s22 }
  0x16   :  { %s2077_s25 = scalar_lea.hbm %s2582_s3, 512 }
  0x17   :  { %p2078_p8 = scmp.ne.s32.totalorder %s2582_s3, %s2077_s25  ;;  %p2081_p9 = scmp.lt.u32.totalorder %s2077_s25, %s2582_s3 }
  0x19   :  { %p2083_p10 = pnand %p2081_p9, %p2078_p8 }
  0x1b   :  { %2086 = shalt.err (!%p2083_p10)
}
  0x1c   :  { %s2087_s1 = scalar_lea.vmem %s57_s20, 512  ;;  %p2092_p12 = scmp.lt.s32.totalorder %s57_s20, %s57_s20 }
  0x1d   :  { %p2088_p11 = scmp.ne.s32.totalorder %s57_s20, %s2087_s1  ;;  %p2093_p13 = scmp.lt.s32.totalorder %s2087_s1, %s2087_s1 }
  0x1f   :  { %p2094_p0 = por %p2093_p13, %p2092_p12 }
  0x21   :  { %p2095_p1 = pnand %p2094_p0, %p2088_p11 }
  0x23   :  { %2098 = shalt.err (!%p2095_p1)
}
  0x24   :  { %62 = dma.hbm_to_vmem [thread:$0]  %s2582_s3, 512, %s57_s20, [#allocation8], %s2218_s15, %s2218_s15, %s2219_s16  }
  0x25   :  { %s2099_s12 = scalar_lea.hbm %s2584_s5, 512 }
  0x26   :  { %p2100_p2 = scmp.ne.s32.totalorder %s2584_s5, %s2099_s12  ;;  %p2103_p3 = scmp.lt.u32.totalorder %s2099_s12, %s2584_s5 }
  0x28   :  { %p2105_p4 = pnand %p2103_p3, %p2100_p2 }
  0x2a   :  { %2108 = shalt.err (!%p2105_p4)
}
  0x2b   :  { %s2109_s19 = scalar_lea.vmem %s81_s22, 512  ;;  %p2114_p6 = scmp.lt.s32.totalorder %s81_s22, %s81_s22 }
  0x2c   :  { %p2110_p5 = scmp.ne.s32.totalorder %s81_s22, %s2109_s19  ;;  %p2115_p7 = scmp.lt.s32.totalorder %s2109_s19, %s2109_s19 }
  0x2e   :  { %p2116_p8 = por %p2115_p7, %p2114_p6 }
  0x30   :  { %p2117_p9 = pnand %p2116_p8, %p2110_p5 }
  0x32   :  { %2120 = shalt.err (!%p2117_p9)
}
  0x33   :  { %86 = dma.hbm_to_vmem [thread:$0]  %s2584_s5, 512, %s81_s22, [#allocation11], %s2218_s15, %s2218_s15, %s2219_s16  }
  0x34   :  { %s2222_s21 = smov [#allocation2]   ;;  %s2223_s24 = smov [#allocation6]  }
  0x35   :  { %s23_s23 = sshll.u32 %s2222_s21, 4  ;;  %s44_s25 = sshll.u32 %s2223_s24, 4  ;;  %s24_s23 = int_to_ptr.vmem [resolvable:$true] %s23_s23  ;;  %s45_s25 = int_to_ptr.vmem [resolvable:$true] %s44_s25 }
  0x36   :  { %s2121_s29 = scalar_lea.hbm %s2579_s0, 128 }
  0x37   :  { %p2122_p10 = scmp.ne.s32.totalorder %s2579_s0, %s2121_s29  ;;  %p2125_p11 = scmp.lt.u32.totalorder %s2121_s29, %s2579_s0 }
  0x39   :  { %p2127_p12 = pnand %p2125_p11, %p2122_p10 }
  0x3b   :  { %2130 = shalt.err (!%p2127_p12)
}
  0x3c   :  { %s2131_s5 = scalar_lea.vmem %s24_s23, 128  ;;  %p2136_p0 = scmp.lt.s32.totalorder %s24_s23, %s24_s23 }
  0x3d   :  { %p2132_p13 = scmp.ne.s32.totalorder %s24_s23, %s2131_s5  ;;  %p2137_p1 = scmp.lt.s32.totalorder %s2131_s5, %s2131_s5 }
  0x3f   :  { %p2138_p2 = por %p2137_p1, %p2136_p0 }
  0x41   :  { %p2139_p3 = pnand %p2138_p2, %p2132_p13 }
  0x43   :  { %2142 = shalt.err (!%p2139_p3)
}
  0x44   :  { %26 = dma.hbm_to_vmem [thread:$0]  %s2579_s0, 128, %s24_s23, [#allocation3]  }
  0x45   :  { %s2143_s13 = scalar_lea.hbm %s2581_s2, 512 }
  0x46   :  { %p2144_p4 = scmp.ne.s32.totalorder %s2581_s2, %s2143_s13  ;;  %p2147_p5 = scmp.lt.u32.totalorder %s2143_s13, %s2581_s2 }
  0x48   :  { %p2149_p6 = pnand %p2147_p5, %p2144_p4 }
  0x4a   :  { %2152 = shalt.err (!%p2149_p6)
}
  0x4b   :  { %s2153_s3 = scalar_lea.vmem %s45_s25, 512  ;;  %p2158_p8 = scmp.lt.s32.totalorder %s45_s25, %s45_s25 }
  0x4c   :  { %p2154_p7 = scmp.ne.s32.totalorder %s45_s25, %s2153_s3  ;;  %p2159_p9 = scmp.lt.s32.totalorder %s2153_s3, %s2153_s3 }
  0x4e   :  { %p2160_p10 = por %p2159_p9, %p2158_p8 }
  0x50   :  { %p2161_p11 = pnand %p2160_p10, %p2154_p7 }
  0x52   :  { %2164 = shalt.err (!%p2161_p11)
}
  0x53   :  { %50 = dma.hbm_to_vmem [thread:$0]  %s2581_s2, 512, %s45_s25, [#allocation5], %s2218_s15, %s2218_s15, %s2219_s16  }
  0x54   :  { %s2224_s21 = smov [#allocation9]   ;;  %s2225_s24 = smov [#allocation12]  }
  0x55   :  { %s68_s23 = sshll.u32 %s2224_s21, 4  ;;  %s92_s26 = sshll.u32 %s2225_s24, 4  ;;  %s69_s23 = int_to_ptr.vmem [resolvable:$true] %s68_s23  ;;  %s93_s26 = int_to_ptr.vmem [resolvable:$true] %s92_s26 }
  0x56   :  { %s2165_s30 = scalar_lea.hbm %s2583_s4, 1536 }
  0x57   :  { %p2166_p12 = scmp.ne.s32.totalorder %s2583_s4, %s2165_s30  ;;  %p2169_p13 = scmp.lt.u32.totalorder %s2165_s30, %s2583_s4 }
  0x59   :  { %p2171_p0 = pnand %p2169_p13, %p2166_p12 }
  0x5b   :  { %2174 = shalt.err (!%p2171_p0)
}
  0x5c   :  { %s2175_s2 = scalar_lea.vmem %s69_s23, 1536  ;;  %p2180_p2 = scmp.lt.s32.totalorder %s69_s23, %s69_s23 }
  0x5d   :  { %p2176_p1 = scmp.ne.s32.totalorder %s69_s23, %s2175_s2  ;;  %p2181_p3 = scmp.lt.s32.totalorder %s2175_s2, %s2175_s2 }
  0x5f   :  { %p2182_p4 = por %p2181_p3, %p2180_p2 }
  0x61   :  { %p2183_p5 = pnand %p2182_p4, %p2176_p1 }
  0x63   :  { %2186 = shalt.err (!%p2183_p5)
}
  0x64   :  { %74 = dma.hbm_to_vmem [thread:$0]  %s2583_s4, 1536, %s69_s23, [#allocation8], %s2218_s15, %s2218_s15, %s2219_s16  }
  0x65   :  { %s2187_s12 = scalar_lea.hbm %s2585_s6, 256 }
  0x66   :  { %p2188_p6 = scmp.ne.s32.totalorder %s2585_s6, %s2187_s12  ;;  %p2191_p7 = scmp.lt.u32.totalorder %s2187_s12, %s2585_s6 }
  0x68   :  { %p2193_p8 = pnand %p2191_p7, %p2188_p6 }
  0x6a   :  { %2196 = shalt.err (!%p2193_p8)
}
  0x6b   :  { %s2197_s19 = scalar_lea.vmem %s93_s26, 256  ;;  %p2202_p10 = scmp.lt.s32.totalorder %s93_s26, %s93_s26 }
  0x6c   :  { %p2198_p9 = scmp.ne.s32.totalorder %s93_s26, %s2197_s19  ;;  %p2203_p11 = scmp.lt.s32.totalorder %s2197_s19, %s2197_s19 }
  0x6e   :  { %p2204_p12 = por %p2203_p11, %p2202_p10 }
  0x70   :  { %p2205_p13 = pnand %p2204_p12, %p2198_p9 }
  0x72   :  { %2208 = shalt.err (!%p2205_p13)
}
  0x73   :  { %98 = dma.hbm_to_vmem [thread:$0]  %s2585_s6, 256, %s93_s26, [#allocation11], %s2218_s15, %s2218_s15, %s2219_s16  }
  0x74   :  { %2209 = dma.done.wait [#allocation3], 128  }
  0x75   :  { %2210 = vsyncadd [#allocation3], 4294967168 }
  0x76   :  { %2211 = dma.done.wait [#allocation5], 768  }
  0x77   :  { %2212 = vsyncadd [#allocation5], 4294966528 }
  0x78   :  { %2213 = dma.done.wait [#allocation8], 2048  }
  0x79   :  { %2214 = vsyncadd [#allocation8], 4294965248 }
  0x7a   :  { %2215 = dma.done.wait [#allocation11], 768  }
  0x7b   :  { %2216 = vsyncadd [#allocation11], 4294966528  ;;  %v2226_v0 = vmov 0.0|0.0   ;;  %vm2227_vm0 = vmmov 0   ;;  %v2228_v1 = vmov 0.0   ;;  %v125_v2 = vld [vmem:[#allocation4] sm:$0xff]  ;;  %v127_v6 = vlaneseq }
  0x7c   :  { %1978 = vmatprep.subr.bf16.mxu0 %v2226_v0  ;;  %1853 = vmatprep.mubr.msk.f32.mxu0 %vm2227_vm0, %v2228_v1  ;;  %v126_v3 = vld [vmem:[#allocation4 + $0x8] sm:$0xff]  ;;  %v122_v5 = vld [vmem:[#allocation2] sm:$0xff]  ;;  %vm131_vm1 = vcmask 130048   ;;  %vm205_vm2 = vcmask 261120   ;;  %v231_v20 = vld [vmem:[#allocation6] sm:$0xff]  ;;  %s2229_s16 = smov 104  }
  0x7d   :  { %1981 = vmatprep.subr.bf16.mxu1 %v2226_v0  ;;  %1864 = vmatprep.mubr.msk.f32.mxu1 %vm2227_vm0, %v2228_v1  ;;  %v1979_v4 = vpack.c.bf16 %v126_v3, %v125_v2  ;;  %v2391_v7 = vshrl.u32 %v127_v6, 7  ;;  %v2397_v9 = vld [vmem:[%s2586_s7] sm:$0xff]  ;;  %v232_v21 = vld [vmem:[#allocation6 + $0x8] sm:$0xff]  ;;  %v233_v22 = vld [vmem:[#allocation6 + $0x10] sm:$0xff]  ;;  %s2230_s0 = smov 120   ;;  %s2231_s20 = smov 112  }
  0x7e   :  { %v1982_v23 = vpack.c.bf16 %v232_v21, %v231_v20  ;;  %v234_v24 = vld [vmem:[#allocation6 + $0x18] sm:$0xff]  ;;  %s2232_s21 = smov 96   ;;  %vm321_vm3 = vcmask 64512   ;;  %s2233_s23 = smov 64  }
  0x7f   :  { %1980 = vmatpush3.bf16.msra.mxu0 %v1979_v4  ;;  %v129_v8 = vsub.s32 0, %v2391_v7  ;;  %v1985_v25 = vpack.c.bf16 %v234_v24, %v233_v22  ;;  %v222_v29 = vsub.s32 1, %v2391_v7  ;;  %v227_v30 = vsub.s32 2, %v2391_v7 }
  0x80   :  { %1867 = vmatprep.subr.mxu0 %v2228_v1  ;;  %1983 = vmatpush3.bf16.msra.mxu1 %v1982_v23  ;;  %v237_v38 = vsub.s32 3, %v2391_v7 }
  0x81   :  { %v130_v10 = vrot.slane %v2397_v9, %v129_v8  ;;  %1984 = vmatprep.subr.bf16.mxu1 %v2226_v0  ;;  %v223_v31 = vrot.slane %v2397_v9, %v222_v29  ;;  %v228_v34 = vrot.slane %v2397_v9, %v227_v30 }
  0x82   :  { %1854 = vmatmul.mubr.msk.f32.vlgmr.msra.gmra.mrb[0].mxu0 %vm131_vm1, %v122_v5  ;;  %v238_v39 = vrot.slane %v2397_v9, %v237_v38 }
  0x83   :  { %1869 = vmatprep.mubr.msk.f32.mxu0 %vm2227_vm0, %v2228_v1 }
  0x84   :  { %1986 = vmatpush3.bf16.msra.mxu1 %v1985_v25 }
  0x85   :  { %1877 = vmatprep.subr.mxu1 %v2228_v1 }
 0x155   :  { %v201_v11 = vpop.f32.mrb[0].mxu0 }
 0x156   :  { %v202_v12 = vadd.f32 %v201_v11, %v130_v10  ;;  %v1855_v13 = vpop.f32.mrb[1].mxu0 }
 0x158   :  { %v206_v14 = vsel %vm205_vm2, %v202_v12, 0.0 }
 0x159   :  { %207 = vadd.xlane.f32.xlu0 %v206_v14 }
 0x1e6   :  { %v208_v15 = vpop.xlane.xlu0 %207 }
 0x1e7   :  { %v210_v16 = vmul.f32 0.03125, %v208_v15 }
 0x1e9   :  { %v211_v17 = vsub.f32 %v202_v12, %v210_v16 }
 0x1eb   :  { %v212_v18 = vmul.f32 %v211_v17, %v211_v17 }
 0x1ed   :  { %v213_v19 = vsel %vm205_vm2, %v212_v18, 0.0 }
 0x1ee   :  { %214 = vadd.xlane.f32.xlu0 %v213_v19 }
 0x27b   :  { %v215_v26 = vpop.xlane.xlu0 %214 }
 0x27c   :  { %v216_v27 = vmul.f32 0.03125, %v215_v26 }
 0x27e   :  { %v217_v28 = vadd.f32 1e-05, %v216_v27 }
 0x280   :  { %2031 = vrsqrt.f32 %v217_v28 }
 0x28a   :  { %v2032_v32 = vpop.eup %2031 }
 0x28b   :  { %v219_v33 = vmul.f32 %v2032_v32, %v211_v17 }
 0x28d   :  { %v224_v35 = vmul.f32 %v223_v31, %v219_v33 }
 0x28f   :  { %v2414_v36 = vadd.f32 %v228_v34, %v224_v35 }
 0x291   :  { %v230_v37 = vmax.f32 %v2414_v36, 0.0 }
 0x293   :  { %1865 = vmatmul.mubr.msk.f32.vlgmr.msra.gmra.mrb[0].mxu1 %vm205_vm2, %v230_v37 }
 0x294   :  { %1879 = vmatprep.mubr.msk.f32.mxu1 %vm2227_vm0, %v2228_v1 }
 0x366   :  { %v308_v40 = vpop.f32.mrb[0].mxu1 }
 0x367   :  { %v309_v41 = vadd.f32 %v308_v40, %v238_v39  ;;  %v1866_v42 = vpop.f32.mrb[1].mxu1 }
 0x368   :  { %v972_v42 = vld [vmem:[#allocation7] sm:$0xff] }
 0x369   :  { %317 = vrot.lane.b32.xlu0 %v309_v41, %s2229_s16  ;;  %313 = vrot.lane.b32.xlu1 %v309_v41, %s2230_s0 }
 0x36d   :  { %315 = vrot.lane.b32.xlu1 %v309_v41, %s2231_s20 }
 0x371   :  { %319 = vrot.lane.b32.xlu1 %v309_v41, %s2232_s21 }
 0x3db   :  { %v2426_v43 = vpop.permute.xlu1 %313  ;;  %v2432_v45 = vpop.permute.xlu0 %317 }
 0x3dc   :  { %396 = vrot.lane.b32.xlu1 %v2426_v43, %s2232_s21 }
 0x3df   :  { %v2429_v44 = vpop.permute.xlu1 %315 }
 0x3e0   :  { %472 = vrot.lane.b32.xlu1 %v2429_v44, %s2232_s21 }
 0x3e3   :  { %v320_v46 = vpop.permute.xlu1 %319 }
 0x3e4   :  { %548 = vrot.lane.b32.xlu1 %v2432_v45, %s2232_s21  ;;  %1868 = vmatpush3.xpose.msk.msra.mxu0 %vm321_vm3, %v320_v46  ;;  %v974_v46 = vld [vmem:[#allocation7 + $0x10] sm:$0xff] }
 0x3e5   :  { %1872 = vmatprep.subr.mxu0 %v2228_v1 }
 0x3e7   :  { %1870 = vmatmul.mubr.msk.f32.vlgmr.msra.gmra.mrb[2].mxu0 %vm321_vm3, %v309_v41 }
 0x3e8   :  { %1874 = vmatprep.mubr.msk.f32.mxu0 %vm2227_vm0, %v2228_v1 }
 0x44e   :  { %v397_v47 = vpop.permute.xlu1 %396 }
 0x44f   :  { %1873 = vmatpush3.xpose.msk.msra.mxu0 %vm321_vm3, %v397_v47 }
 0x450   :  { %1882 = vmatprep.subr.mxu0 %v2228_v1 }
 0x452   :  { %1875 = vmatmul.mubr.msk.f32.vlgmr.msra.gmra.mrb[4].mxu0 %vm321_vm3, %v2426_v43  ;;  %v473_v48 = vpop.permute.xlu1 %472 }
 0x453   :  { %1878 = vmatpush3.xpose.msk.msra.mxu1 %vm321_vm3, %v473_v48  ;;  %1884 = vmatprep.mubr.msk.f32.mxu0 %vm2227_vm0, %v2228_v1 }
 0x454   :  { %1887 = vmatprep.subr.mxu1 %v2228_v1 }
 0x456   :  { %1880 = vmatmul.mubr.msk.f32.vlgmr.msra.gmra.mrb[2].mxu1 %vm321_vm3, %v2429_v44  ;;  %v549_v49 = vpop.permute.xlu1 %548 }
 0x457   :  { %1883 = vmatpush3.xpose.msk.msra.mxu0 %vm321_vm3, %v549_v49  ;;  %1889 = vmatprep.mubr.msk.f32.mxu1 %vm2227_vm0, %v2228_v1  ;;  %v975_v49 = vld [vmem:[#allocation7 + $0x18] sm:$0xff] }
 0x458   :  { %1892 = vmatprep.subr.mxu0 %v2228_v1 }
 0x45a   :  { %1885 = vmatmul.mubr.msk.f32.vlgmr.msra.gmra.mrb[6].mxu0 %vm321_vm3, %v2432_v45 }
 0x45b   :  { %1894 = vmatprep.mubr.msk.f32.mxu0 %vm2227_vm0, %v2228_v1 }
 0x4ba   :  { %v392_v50 = vpop.f32.mrb[2].mxu0 }
 0x4bb   :  { %v1871_v51 = vpop.f32.mrb[3].mxu0  ;;  %v624_v52 = vsel %vm321_vm3, %v392_v50, -inf }
 0x4bc   :  { %625 = vmax.xlane.f32.xlu1 %v624_v52 }
 0x525   :  { %v468_v53 = vpop.f32.mrb[4].mxu0 }
 0x526   :  { %v1876_v54 = vpop.f32.mrb[5].mxu0  ;;  %v627_v55 = vsel %vm321_vm3, %v468_v53, -inf }
 0x527   :  { %628 = vmax.xlane.f32.xlu0 %v627_v55 }
 0x529   :  { %v544_v56 = vpop.f32.mrb[2].mxu1 }
 0x52a   :  { %v1881_v57 = vpop.f32.mrb[3].mxu1  ;;  %v630_v58 = vsel %vm321_vm3, %v544_v56, -inf }
 0x52b   :  { %631 = vmax.xlane.f32.xlu1 %v630_v58  ;;  %v1282_v57 = vld [vmem:[#allocation9 + $0x8] sm:$0xff] }
 0x52d   :  { %v620_v59 = vpop.f32.mrb[6].mxu0 }
 0x52e   :  { %v1886_v60 = vpop.f32.mrb[7].mxu0  ;;  %v633_v61 = vsel %vm321_vm3, %v620_v59, -inf }
 0x52f   :  { %634 = vmax.xlane.f32.xlu0 %v633_v61  ;;  %v1284_v60 = vld [vmem:[#allocation9 + $0x18] sm:$0xff] }
 0x53c   :  { %668 = vrot.lane.b32.xlu1 %v309_v41, %s2233_s23 }
 0x549   :  { %v626_v62 = vpop.xlane.xlu1 %625 }
 0x54a   :  { %v636_v63 = vsub.f32 %v392_v50, %v626_v62 }
 0x54c   :  { %v640_v2 = vmul.f32 1.442695, %v636_v63 }
 0x54e   :  { %2033 = vpow2.f32 %v640_v2 }
 0x558   :  { %v2034_v3 = vpop.eup %2033 }
 0x559   :  { %v648_v4 = vsel %vm321_vm3, %v2034_v3, 0.0 }
 0x560   :  { %649 = vadd.xlane.f32.xlu1 %v648_v4 }
 0x5b4   :  { %v629_v5 = vpop.xlane.xlu0 %628 }
 0x5b5   :  { %v637_v6 = vsub.f32 %v468_v53, %v629_v5 }
 0x5b7   :  { %v642_v10 = vmul.f32 1.442695, %v637_v6 }
 0x5b8   :  { %v632_v11 = vpop.xlane.xlu1 %631 }
 0x5b9   :  { %2035 = vpow2.f32 %v642_v10  ;;  %v638_v12 = vsub.f32 %v544_v56, %v632_v11  ;;  %v1281_v56 = vld [vmem:[#allocation9] sm:$0xff]  ;;  %v1277_v11 = vsub.s32 4, %v2391_v7 }
 0x5ba   :  { %v1988_v58 = vpack.c.bf16 %v1282_v57, %v1281_v56 }
 0x5bb   :  { %v644_v13 = vmul.f32 1.442695, %v638_v12 }
 0x5bc   :  { %v669_v14 = vpop.permute.xlu1 %668  ;;  %v635_v15 = vpop.xlane.xlu0 %634 }
 0x5bd   :  { %2037 = vpow2.f32 %v644_v13  ;;  %v639_v16 = vsub.f32 %v620_v59, %v635_v15  ;;  %1888 = vmatpush3.msra.mxu1 %v669_v14  ;;  %v1283_v59 = vld [vmem:[#allocation9 + $0x10] sm:$0xff] }
 0x5be   :  { %1897 = vmatprep.subr.mxu1 %v2228_v1  ;;  %v1991_v61 = vpack.c.bf16 %v1284_v60, %v1283_v59 }
 0x5bf   :  { %v646_v17 = vmul.f32 1.442695, %v639_v16  ;;  %v1278_v16 = vrot.slane %v2397_v9, %v1277_v11 }
 0x5c1   :  { %2039 = vpow2.f32 %v646_v17 }
 0x5c3   :  { %v2036_v18 = vpop.eup %2035 }
 0x5c4   :  { %v651_v19 = vsel %vm321_vm3, %v2036_v18, 0.0 }
 0x5c5   :  { %652 = vadd.xlane.f32.xlu0 %v651_v19 }
 0x5c7   :  { %v2038_v20 = vpop.eup %2037 }
 0x5c8   :  { %v654_v21 = vsel %vm321_vm3, %v2038_v20, 0.0 }
 0x5c9   :  { %655 = vadd.xlane.f32.xlu1 %v654_v21 }
 0x5cb   :  { %v2040_v22 = vpop.eup %2039 }
 0x5cc   :  { %v657_v23 = vsel %vm321_vm3, %v2040_v22, 0.0 }
 0x5cd   :  { %658 = vadd.xlane.f32.xlu0 %v657_v23 }
 0x5da   :  { %820 = vrot.lane.b32.xlu1 %v2429_v44, %s2233_s23 }
 0x5de   :  { %896 = vrot.lane.b32.xlu1 %v2432_v45, %s2233_s23  ;;  %v973_v45 = vld [vmem:[#allocation7 + $0x8] sm:$0xff] }
 0x5e3   :  { %744 = vrot.lane.b32.xlu0 %v2426_v43, %s2233_s23 }
 0x5ed   :  { %v650_v24 = vpop.xlane.xlu1 %649 }
 0x5ee   :  { %2041 = vrcp.f32 %v650_v24 }
 0x5f8   :  { %v2042_v25 = vpop.eup %2041 }
 0x5f9   :  { %v664_v26 = vmul.f32 %v2042_v25, %v2034_v3 }
 0x5fb   :  { %1890 = vmatmul.mubr.msk.f32.vlgmr.msra.gmra.mrb[4].mxu1 %vm321_vm3, %v664_v26 }
 0x5fc   :  { %1899 = vmatprep.mubr.msk.f32.mxu1 %vm2227_vm0, %v2228_v1 }
 0x652   :  { %v653_v27 = vpop.xlane.xlu0 %652 }
 0x653   :  { %2043 = vrcp.f32 %v653_v27 }
 0x656   :  { %v656_v28 = vpop.xlane.xlu1 %655 }
 0x657   :  { %2045 = vrcp.f32 %v656_v28 }
 0x65a   :  { %v821_v31 = vpop.permute.xlu1 %820  ;;  %v659_v32 = vpop.xlane.xlu0 %658 }
 0x65b   :  { %2047 = vrcp.f32 %v659_v32  ;;  %1898 = vmatpush3.msra.mxu1 %v821_v31 }
 0x65c   :  { %1907 = vmatprep.subr.mxu1 %v2228_v1 }
 0x65d   :  { %v2044_v33 = vpop.eup %2043 }
 0x65e   :  { %v665_v34 = vmul.f32 %v2044_v33, %v2036_v18  ;;  %v745_v35 = vpop.permute.xlu0 %744  ;;  %v897_v39 = vpop.permute.xlu1 %896  ;;  %v1388_v33 = vld [vmem:[#allocation9 + $0x20] sm:$0xff] }
 0x65f   :  { %1893 = vmatpush3.msra.mxu0 %v745_v35 }
 0x660   :  { %1895 = vmatmul.mubr.msk.f32.vlgmr.msra.gmra.mrb[8].mxu0 %vm321_vm3, %v665_v34  ;;  %1902 = vmatprep.subr.mxu0 %v2228_v1  ;;  %v1389_v34 = vld [vmem:[#allocation9 + $0x28] sm:$0xff] }
 0x661   :  { %v2046_v40 = vpop.eup %2045  ;;  %1903 = vmatpush3.msra.mxu0 %v897_v39  ;;  %1904 = vmatprep.mubr.msk.f32.mxu0 %vm2227_vm0, %v2228_v1  ;;  %v1994_v35 = vpack.c.bf16 %v1389_v34, %v1388_v33  ;;  %v1390_v39 = vld [vmem:[#allocation9 + $0x30] sm:$0xff]  ;;  %v1602_v33 = vld [vmem:[#allocation10 + $0x8] sm:$0xff] }
 0x662   :  { %v666_v41 = vmul.f32 %v2046_v40, %v2038_v20  ;;  %1912 = vmatprep.subr.mxu0 %v2228_v1  ;;  %v1391_v40 = vld [vmem:[#allocation9 + $0x38] sm:$0xff]  ;;  %v1603_v34 = vld [vmem:[#allocation10 + $0x10] sm:$0xff] }
 0x664   :  { %1900 = vmatmul.mubr.msk.f32.vlgmr.msra.gmra.mrb[6].mxu1 %vm321_vm3, %v666_v41  ;;  %v1997_v41 = vpack.c.bf16 %v1391_v40, %v1390_v39 }
 0x665   :  { %v2048_v43 = vpop.eup %2047  ;;  %1908 = vmatpush3.msra.mxu1 %v972_v42  ;;  %1909 = vmatprep.mubr.msk.f32.mxu1 %vm2227_vm0, %v2228_v1 }
 0x666   :  { %v667_v44 = vmul.f32 %v2048_v43, %v2040_v22  ;;  %1917 = vmatprep.subr.mxu1 %v2228_v1  ;;  %v1287_v22 = vsub.s32 5, %v2391_v7 }
 0x668   :  { %1905 = vmatmul.mubr.msk.f32.vlgmr.msra.gmra.mrb[10].mxu0 %vm321_vm3, %v667_v44  ;;  %v1288_v23 = vrot.slane %v2397_v9, %v1287_v22 }
 0x669   :  { %1914 = vmatprep.mubr.msk.f32.mxu0 %vm2227_vm0, %v2228_v1  ;;  %1913 = vmatpush3.msra.mxu0 %v973_v45  ;;  %v2531_v45 = vld [vmem:[%s2586_s7 + $0x8] sm:$0xff] }
 0x66a   :  { %1922 = vmatprep.subr.mxu0 %v2228_v1 }
 0x6ce   :  { %v740_v47 = vpop.f32.mrb[4].mxu1 }
 0x6cf   :  { %v1891_v48 = vpop.f32.mrb[5].mxu1  ;;  %1910 = vmatmul.mubr.msk.f32.vlgmr.msra.gmra.mrb[8].mxu1 %vm321_vm3, %v740_v47 }
 0x6d0   :  { %1918 = vmatpush3.msra.mxu1 %v974_v46  ;;  %1919 = vmatprep.mubr.msk.f32.mxu1 %vm2227_vm0, %v2228_v1  ;;  %v1378_v46 = vrot.slane %v2531_v45, %v129_v8  ;;  %v1383_v48 = vrot.slane %v2531_v45, %v237_v38 }
 0x6d1   :  { %1987 = vmatprep.subr.bf16.mxu1 %v2226_v0 }
 0x733   :  { %v816_v50 = vpop.f32.mrb[8].mxu0 }
 0x734   :  { %v1896_v51 = vpop.f32.mrb[9].mxu0  ;;  %1915 = vmatmul.mubr.msk.f32.vlgmr.msra.gmra.mrb[12].mxu0 %vm321_vm3, %v816_v50 }
 0x735   :  { %1923 = vmatpush3.msra.mxu0 %v975_v49  ;;  %1924 = vmatprep.mubr.msk.f32.mxu0 %vm2227_vm0, %v2228_v1 }
 0x736   :  { %1993 = vmatprep.subr.bf16.mxu0 %v2226_v0 }
 0x737   :  { %v892_v52 = vpop.f32.mrb[6].mxu1 }
 0x738   :  { %v1901_v53 = vpop.f32.mrb[7].mxu1  ;;  %1920 = vmatmul.mubr.msk.f32.vlgmr.msra.gmra.mrb[10].mxu1 %vm321_vm3, %v892_v52 }
 0x739   :  { %1935 = vmatprep.mubr.msk.f32.mxu1 %vm2227_vm0, %v2228_v1  ;;  %1989 = vmatpush3.bf16.msra.mxu1 %v1988_v58 }
 0x73a   :  { %1990 = vmatprep.subr.bf16.mxu1 %v2226_v0 }
 0x73b   :  { %v968_v54 = vpop.f32.mrb[10].mxu0 }
 0x73c   :  { %v1906_v55 = vpop.f32.mrb[11].mxu0  ;;  %1925 = vmatmul.mubr.msk.f32.vlgmr.msra.gmra.mrb[14].mxu0 %vm321_vm3, %v968_v54  ;;  %v1394_v54 = vsub.s32 6, %v2391_v7 }
 0x73d   :  { %1946 = vmatprep.mubr.msk.f32.mxu0 %vm2227_vm0, %v2228_v1  ;;  %1992 = vmatpush3.bf16.msra.mxu1 %v1991_v61 }
 0x73e   :  { %1999 = vmatprep.subr.bf16.mxu1 %v2226_v0  ;;  %1995 = vmatpush3.bf16.msra.mxu0 %v1994_v35  ;;  %v1395_v8 = vrot.slane %v2397_v9, %v1394_v54  ;;  %v1604_v35 = vld [vmem:[#allocation10 + $0x18] sm:$0xff] }
 0x73f   :  { %1996 = vmatprep.subr.bf16.mxu0 %v2226_v0 }
 0x742   :  { %1998 = vmatpush3.bf16.msra.mxu0 %v1997_v41 }
 0x743   :  { %2005 = vmatprep.subr.bf16.mxu0 %v2226_v0 }
 0x7a2   :  { %v1045_v62 = vpop.f32.mrb[8].mxu1 }
 0x7a3   :  { %v1911_v63 = vpop.f32.mrb[9].mxu1  ;;  %v1268_v3 = vsel %vm205_vm2, %v1045_v62, 0.0 }
 0x7a4   :  { %v1495_v63 = vld [vmem:[#allocation9 + $0x40] sm:$0xff] }
 0x807   :  { %v1118_v2 = vpop.f32.mrb[12].mxu0 }
 0x808   :  { %v1269_v4 = vsel %vm205_vm2, %v1118_v2, 0.0  ;;  %v1916_v5 = vpop.f32.mrb[13].mxu0  ;;  %v1496_v2 = vld [vmem:[#allocation9 + $0x48] sm:$0xff] }
 0x809   :  { %v1270_v6 = vadd.f32 %v1269_v4, %v1268_v3  ;;  %v2000_v3 = vpack.c.bf16 %v1496_v2, %v1495_v63  ;;  %v1497_v4 = vld [vmem:[#allocation9 + $0x50] sm:$0xff]  ;;  %v1498_v5 = vld [vmem:[#allocation9 + $0x58] sm:$0xff] }
 0x80b   :  { %v1191_v10 = vpop.f32.mrb[10].mxu1 }
 0x80c   :  { %v1271_v12 = vsel %vm205_vm2, %v1191_v10, 0.0  ;;  %v1921_v13 = vpop.f32.mrb[11].mxu1 }
 0x80d   :  { %v1272_v14 = vadd.f32 %v1271_v12, %v1270_v6  ;;  %v2003_v6 = vpack.c.bf16 %v1498_v5, %v1497_v4 }
 0x80f   :  { %v1264_v15 = vpop.f32.mrb[14].mxu0 }
 0x810   :  { %v1273_v17 = vsel %vm205_vm2, %v1264_v15, 0.0  ;;  %v1926_v18 = vpop.f32.mrb[15].mxu0 }
 0x811   :  { %v1274_v19 = vadd.f32 %v1273_v17, %v1272_v14  ;;  %v1485_v14 = vrot.slane %v2531_v45, %v222_v29 }
 0x813   :  { %v1279_v20 = vadd.f32 %v1278_v16, %v1274_v19  ;;  %v1490_v16 = vrot.slane %v2531_v45, %v1277_v11 }
 0x815   :  { %v1280_v21 = vadd.f32 %v1279_v20, %v230_v37 }
 0x817   :  { %1936 = vmatmul.mubr.msk.f32.vlgmr.msra.gmra.mrb[12].mxu1 %vm205_vm2, %v1280_v21 }
 0x818   :  { %1957 = vmatprep.mubr.msk.f32.mxu1 %vm2227_vm0, %v2228_v1  ;;  %2001 = vmatpush3.bf16.msra.mxu1 %v2000_v3 }
 0x819   :  { %2002 = vmatprep.subr.bf16.mxu1 %v2226_v0 }
 0x81c   :  { %2004 = vmatpush3.bf16.msra.mxu1 %v2003_v6 }
 0x81d   :  { %2011 = vmatprep.subr.bf16.mxu1 %v2226_v0 }
 0x8ea   :  { %v1358_v24 = vpop.f32.mrb[12].mxu1 }
 0x8eb   :  { %v1359_v25 = vadd.f32 %v1358_v24, %v1288_v23  ;;  %v1937_v26 = vpop.f32.mrb[13].mxu1  ;;  %v1501_v23 = vsub.s32 7, %v2391_v7 }
 0x8ed   :  { %v1362_v27 = vsel %vm205_vm2, %v1359_v25, 0.0  ;;  %v1502_v24 = vrot.slane %v2397_v9, %v1501_v23  ;;  %v2009_v9 = vpack.c.bf16 %v1604_v35, %v1603_v34 }
 0x8ee   :  { %1363 = vadd.xlane.f32.xlu0 %v1362_v27 }
 0x97b   :  { %v1364_v28 = vpop.xlane.xlu0 %1363 }
 0x97c   :  { %v1365_v36 = vmul.f32 0.03125, %v1364_v28 }
 0x97e   :  { %v1366_v37 = vsub.f32 %v1359_v25, %v1365_v36 }
 0x980   :  { %v1367_v31 = vmul.f32 %v1366_v37, %v1366_v37 }
 0x982   :  { %v1368_v32 = vsel %vm205_vm2, %v1367_v31, 0.0 }
 0x983   :  { %1369 = vadd.xlane.f32.xlu1 %v1368_v32  ;;  %v1601_v32 = vld [vmem:[#allocation10] sm:$0xff] }
 0xa10   :  { %v1370_v42 = vpop.xlane.xlu1 %1369 }
 0xa11   :  { %v1371_v43 = vmul.f32 0.03125, %v1370_v42  ;;  %v1592_v42 = vrot.slane %v2531_v45, %v227_v30  ;;  %v1608_v30 = vrot.slane %v2531_v45, %v1394_v54 }
 0xa13   :  { %v1372_v44 = vadd.f32 1e-05, %v1371_v43 }
 0xa15   :  { %2049 = vrsqrt.f32 %v1372_v44  ;;  %v1597_v44 = vrot.slane %v2531_v45, %v1287_v22  ;;  %v1688_v22 = vrot.slane %v2531_v45, %v1501_v23 }
 0xa1f   :  { %v2050_v47 = vpop.eup %2049 }
 0xa20   :  { %v1374_v49 = vmul.f32 %v2050_v47, %v1366_v37 }
 0xa22   :  { %v1379_v50 = vmul.f32 %v1378_v46, %v1374_v49 }
 0xa24   :  { %v1384_v51 = vadd.f32 %v1383_v48, %v1379_v50 }
 0xa26   :  { %v1385_v52 = vmax.f32 %v1384_v51, 0.0  ;;  %v1684_v51 = vld [vmem:[#allocation12 + $0x8] sm:$0xff] }
 0xa28   :  { %v1386_v53 = vadd.f32 %v1385_v52, %v1280_v21 }
 0xa2a   :  { %1947 = vmatmul.mubr.msk.f32.vlgmr.msra.gmra.mrb[16].mxu0 %vm205_vm2, %v1386_v53 }
 0xa2b   :  { %1968 = vmatprep.mubr.msk.f32.mxu0 %vm2227_vm0, %v2228_v1 }
 0xafd   :  { %v1465_v55 = vpop.f32.mrb[16].mxu0 }
 0xafe   :  { %v1466_v56 = vadd.f32 %v1465_v55, %v1395_v8  ;;  %v1948_v57 = vpop.f32.mrb[17].mxu0 }
 0xb00   :  { %v1469_v38 = vsel %vm205_vm2, %v1466_v56, 0.0 }
 0xb01   :  { %1470 = vadd.xlane.f32.xlu0 %v1469_v38 }
 0xb8e   :  { %v1471_v58 = vpop.xlane.xlu0 %1470 }
 0xb8f   :  { %v1472_v59 = vmul.f32 0.03125, %v1471_v58 }
 0xb91   :  { %v1473_v60 = vsub.f32 %v1466_v56, %v1472_v59 }
 0xb93   :  { %v1474_v61 = vmul.f32 %v1473_v60, %v1473_v60 }
 0xb95   :  { %v1475_v62 = vsel %vm205_vm2, %v1474_v61, 0.0 }
 0xb96   :  { %1476 = vadd.xlane.f32.xlu0 %v1475_v62 }
 0xc23   :  { %v1477_v10 = vpop.xlane.xlu0 %1476 }
 0xc24   :  { %v1478_v12 = vmul.f32 0.03125, %v1477_v10 }
 0xc26   :  { %v1479_v13 = vadd.f32 1e-05, %v1478_v12 }
 0xc28   :  { %2051 = vrsqrt.f32 %v1479_v13 }
 0xc32   :  { %v2052_v15 = vpop.eup %2051 }
 0xc33   :  { %v1481_v17 = vmul.f32 %v2052_v15, %v1473_v60 }
 0xc35   :  { %v1486_v18 = vmul.f32 %v1485_v14, %v1481_v17 }
 0xc37   :  { %v1491_v19 = vadd.f32 %v1490_v16, %v1486_v18 }
 0xc39   :  { %v1492_v20 = vmax.f32 %v1491_v19, 0.0 }
 0xc3b   :  { %v1493_v21 = vadd.f32 %v1492_v20, %v1386_v53 }
 0xc3d   :  { %1958 = vmatmul.mubr.msk.f32.vlgmr.msra.gmra.mrb[14].mxu1 %vm205_vm2, %v1493_v21 }
 0xc3e   :  { %1975 = vmatprep.mubr.msk.f32.mxu1 %vm2227_vm0, %v2228_v1  ;;  %v2006_v1 = vpack.c.bf16 %v1602_v33, %v1601_v32 }
 0xc40   :  { %2007 = vmatpush3.bf16.msra.mxu0 %v2006_v1 }
 0xc41   :  { %2008 = vmatprep.subr.bf16.mxu0 %v2226_v0  ;;  %v1683_v0 = vld [vmem:[#allocation12] sm:$0xff] }
 0xc42   :  { %v2012_v52 = vpack.c.bf16 %v1684_v51, %v1683_v0 }
 0xc44   :  { %2010 = vmatpush3.bf16.msra.mxu0 %v2009_v9  ;;  %2013 = vmatpush3.bf16.msra.mxu1 %v2012_v52 }
 0xd10   :  { %v1572_v29 = vpop.f32.mrb[14].mxu1 }
 0xd11   :  { %v1573_v25 = vadd.f32 %v1572_v29, %v1502_v24  ;;  %v1959_v26 = vpop.f32.mrb[15].mxu1 }
 0xd13   :  { %v1576_v27 = vsel %vm205_vm2, %v1573_v25, 0.0 }
 0xd14   :  { %1577 = vadd.xlane.f32.xlu1 %v1576_v27 }
 0xda1   :  { %v1578_v11 = vpop.xlane.xlu1 %1577 }
 0xda2   :  { %v1579_v28 = vmul.f32 0.03125, %v1578_v11 }
 0xda4   :  { %v1580_v36 = vsub.f32 %v1573_v25, %v1579_v28 }
 0xda6   :  { %v1581_v37 = vmul.f32 %v1580_v36, %v1580_v36 }
 0xda8   :  { %v1582_v31 = vsel %vm205_vm2, %v1581_v37, 0.0 }
 0xda9   :  { %1583 = vadd.xlane.f32.xlu0 %v1582_v31 }
 0xe36   :  { %v1584_v39 = vpop.xlane.xlu0 %1583 }
 0xe37   :  { %v1585_v40 = vmul.f32 0.03125, %v1584_v39 }
 0xe39   :  { %v1586_v41 = vadd.f32 1e-05, %v1585_v40 }
 0xe3b   :  { %2053 = vrsqrt.f32 %v1586_v41 }
 0xe45   :  { %v2054_v43 = vpop.eup %2053 }
 0xe46   :  { %v1588_v46 = vmul.f32 %v2054_v43, %v1580_v36 }
 0xe48   :  { %v1593_v47 = vmul.f32 %v1592_v42, %v1588_v46 }
 0xe4a   :  { %v1598_v48 = vadd.f32 %v1597_v44, %v1593_v47 }
 0xe4c   :  { %v1599_v49 = vmax.f32 %v1598_v48, 0.0 }
 0xe4e   :  { %v1600_v50 = vadd.f32 %v1599_v49, %v1493_v21 }
 0xe50   :  { %1969 = vmatmul.mubr.msk.f32.vlgmr.msra.gmra.mrb[18].mxu0 %vm205_vm2, %v1600_v50 }
 0xf23   :  { %v1678_v53 = vpop.f32.mrb[18].mxu0 }
 0xf24   :  { %v1679_v8 = vadd.f32 %v1678_v53, %v1608_v30  ;;  %v1970_v55 = vpop.f32.mrb[19].mxu0 }
 0xf26   :  { %v1682_v56 = vmax.f32 %v1679_v8, 0.0 }
 0xf28   :  { %1976 = vmatmul.mubr.msk.f32.vlgmr.msra.gmra.mrb[16].mxu1 %vm131_vm1, %v1682_v56 }
 0xffb   :  { %v1758_v57 = vpop.f32.mrb[16].mxu1 }
 0xffc   :  { %v1759_v38 = vadd.f32 %v1758_v57, %v1688_v22  ;;  %v1977_v58 = vpop.f32.mrb[17].mxu1 }
 0xffe   :  { %1762 = vst [vmem:[%s2587_s8] sm:$0xff] %v1759_v38 }
 0xfff   :  { %1767 = vsyncpa [#allocation3], 1 }
0x1000   :  { %1768 = vsyncpa [#allocation5], 1 }
0x1001   :  { %1769 = vsyncpa [#allocation8], 1 }
0x1002   :  { %1770 = vsyncpa [#allocation11], 1 }

</bundles_post_ra>
